<compile_context>
chip_gen: v5e
topology: v5e:2x2
jax: 0.10.0
libtpu: 0.0.40
codegen_flags: <defaults>
</compile_context>

<pallas_src>
import functools

import jax
import jax.numpy as jnp
from jax.experimental import pallas as pl
from jax.experimental.pallas import tpu as pltpu


OUT_LANES = 128          # lane-dense packed output width (multiple of 128)
_L_VALUE = 0             # lane holding the critic value
_L_ACTION = 1            # lane holding the (integer-valued) mode action
_L_LOGP = 2              # lane holding log pi(action | s)
_L_ENT = 3               # lane holding per-sample entropy


def policy_head_kernel(feat_ref, w_ref, b_ref, out_ref):
    feat = feat_ref[...]                              # [TB, H], native dtype
    w = w_ref[...]                                    # [H, A+1], native dtype
    b = b_ref[...].astype(jnp.float32)                # [1, A+1], f32 accumulation

    # Single fused MXU matmul for actor logits + critic value (f32 accumulate).
    fused = jnp.dot(feat, w, preferred_element_type=jnp.float32) + b  # [TB, A+1]

    num_actions = w.shape[1] - 1
    logits = fused[:, :num_actions]                   # [TB, A]
    value = fused[:, num_actions:]                    # [TB, 1]

    # log-softmax over the action dimension (exp/log on EUP, reductions on XLU).
    m = jnp.max(logits, axis=-1, keepdims=True)       # [TB, 1]
    z = logits - m
    sumexp = jnp.sum(jnp.exp(z), axis=-1, keepdims=True)
    logsum = jnp.log(sumexp)                          # [TB, 1]
    log_probs_all = z - logsum                        # [TB, A]
    probs = jnp.exp(log_probs_all)

    # deterministic action = argmax over logits (CustomFixedCategorical.mode()),
    # lowest index on ties, clamped for non-finite rows.
    tb, a = logits.shape
    lane_idx = jax.lax.broadcasted_iota(jnp.int32, (tb, a), 1)
    is_max = logits >= m
    action = jnp.min(jnp.where(is_max, lane_idx, a), axis=-1, keepdims=True)
    action = jnp.minimum(action, a - 1)               # [TB, 1] int32

    # log pi(mode) = log_probs_all at the argmax = (m - m) - logsum = -logsum.
    action_logp = -logsum                                                  # [TB,1]
    entropy = -jnp.sum(probs * log_probs_all, axis=-1, keepdims=True)      # [TB,1]

    # Pack the four per-sample scalars into one lane-dense f32 slab
    # (single unmasked vst + lane-dense writeback DMA).
    lane_o = jax.lax.broadcasted_iota(jnp.int32, (tb, OUT_LANES), 1)
    packed = jnp.zeros((tb, OUT_LANES), jnp.float32)
    packed = jnp.where(lane_o == _L_VALUE, value, packed)
    packed = jnp.where(lane_o == _L_ACTION, action.astype(jnp.float32), packed)
    packed = jnp.where(lane_o == _L_LOGP, action_logp, packed)
    packed = jnp.where(lane_o == _L_ENT, entropy, packed)
    out_ref[...] = packed


@functools.partial(jax.jit, static_argnames=("tb_max",))
def policy_non_oracle_heads(features, wa, ba, wc, bc, *, tb_max=256):
    """Fused policy-head forward.

    features: [B, H]
    wa: [H, A], ba: [1, A]   (CategoricalNet linear, pre-transposed)
    wc: [H, 1], bc: [1, 1]   (CriticHead linear, pre-transposed)

    Returns (value [B,1] f32, action [B,1] i32, action_log_probs [B,1] f32,
             entropy [B,1] f32).  `evaluate_actions` entropy is entropy.mean().
    """
    B, H = features.shape
    A = wa.shape[1]

    # Fuse actor + critic heads into a single matmul operand (offline concat).
    w_fused = jnp.concatenate([wa, wc], axis=1)       # [H, A+1]
    b_fused = jnp.concatenate([ba, bc], axis=1)       # [1, A+1]

    # Batch tiling: TB multiple of 8, conservative for v7x's 64 MiB VMEM.
    if B <= tb_max:
        tb, bp = B, B
    else:
        tb = tb_max
        bp = pl.cdiv(B, tb) * tb
    feats = features if bp == B else jnp.pad(features, ((0, bp - B), (0, 0)))
    n_blocks = bp // tb

    packed = pl.pallas_call(
        policy_head_kernel,
        out_shape=jax.ShapeDtypeStruct((bp, OUT_LANES), jnp.float32),
        grid=(n_blocks,),
        in_specs=[
            pl.BlockSpec((tb, H), lambda i: (i, 0)),        # feature tiles (pipelined)
            pl.BlockSpec((H, A + 1), lambda i: (0, 0)),     # fused weights (resident)
            pl.BlockSpec((1, A + 1), lambda i: (0, 0)),     # fused bias (resident)
        ],
        out_specs=pl.BlockSpec((tb, OUT_LANES), lambda i: (i, 0)),
        compiler_params=pltpu.CompilerParams(
            dimension_semantics=("parallel",)),
    )(feats, w_fused, b_fused)

    packed = packed[:B]
    value = packed[:, _L_VALUE:_L_VALUE + 1]
    action = packed[:, _L_ACTION:_L_ACTION + 1].astype(jnp.int32)
    action_log_probs = packed[:, _L_LOGP:_L_LOGP + 1]
    entropy = packed[:, _L_ENT:_L_ENT + 1]
    return value, action, action_log_probs, entropy


def init_params(key, hidden_size, dim_actions):
    """Mirror the PyTorch __init__:
       CategoricalNet: orthogonal(gain=0.01) weight, zero bias
       CriticHead:     orthogonal(gain=1.0) weight, zero bias
    Weights stored transposed ([in, out]) for the kernel layout."""
    ka, kc = jax.random.split(key)
    wa = jax.nn.initializers.orthogonal(scale=0.01)(
        ka, (hidden_size, dim_actions), jnp.float32)
    ba = jnp.zeros((1, dim_actions), jnp.float32)
    wc = jax.nn.initializers.orthogonal(scale=1.0)(
        kc, (hidden_size, 1), jnp.float32)
    bc = jnp.zeros((1, 1), jnp.float32)
    return wa, ba, wc, bc


def _reference(features, wa, ba, wc, bc):
    logits = features @ wa + ba
    logp_all = jax.nn.log_softmax(logits, axis=-1)
    value = features @ wc + bc
    action = jnp.argmax(logits, axis=-1, keepdims=True).astype(jnp.int32)
    alogp = jnp.take_along_axis(logp_all, action, axis=-1)
    ent = -jnp.sum(jnp.exp(logp_all) * logp_all, axis=-1, keepdims=True)
    return value, action, alogp, ent


def _check(features, wa, ba, wc, bc):
    value, action, alogp, ent = jax.block_until_ready(
        policy_non_oracle_heads(features, wa, ba, wc, bc))
    rv, ra, rl, re = _reference(features, wa, ba, wc, bc)
    assert jnp.allclose(value, rv, atol=1e-5), "value mismatch"
    assert jnp.array_equal(action, ra), "action mismatch"
    assert jnp.allclose(alogp, rl, atol=1e-5), "log_prob mismatch"
    assert jnp.allclose(ent, re, atol=1e-5), "entropy mismatch"


if __name__ == "__main__":
    H = 32           # net.output_size (hidden size)
    A = 4            # dim_actions

    key = jax.random.PRNGKey(0)
    kf, kp, kf2 = jax.random.split(key, 3)
    wa, ba, wc, bc = init_params(kp, H, A)

    # Small-batch case (single tile, block == full array).
    B = 2
    features = jax.random.normal(kf, (B, H), dtype=jnp.float32)
    _check(features, wa, ba, wc, bc)

    # Larger batch exercising batch tiling + padding + parallel grid axis.
    B2 = 520
    features2 = jax.random.normal(kf2, (B2, H), dtype=jnp.float32)
    _check(features2, wa, ba, wc, bc)

    print("KERNEL_OK")
</pallas_src>

<mosaic_0001>
module attributes {stable_mosaic.version = 11 : i64} {
  func.func @policy_head_kernel(%arg0: i32, %arg1: memref<2x32xf32, #tpu.memory_space<vmem>>, %arg2: memref<32x5xf32, #tpu.memory_space<vmem>>, %arg3: memref<1x5xf32, #tpu.memory_space<vmem>>, %arg4: memref<2x128xf32, #tpu.memory_space<vmem>>) attributes {dimension_semantics = [#tpu.dimension_semantics<parallel>], iteration_bounds = array<i64: 1>, scalar_prefetch = 0 : i64, scratch_operands = 0 : i64, tpu.core_type = #tpu.core_type<tc>, window_params = [{transform_indices = @transform_0, window_bounds = array<i64: 2, 32>}, {pipeline_mode = #tpu.pipeline_mode<synchronous>, transform_indices = @transform_1, window_bounds = array<i64: 32, 5>}, {pipeline_mode = #tpu.pipeline_mode<synchronous>, transform_indices = @transform_2, window_bounds = array<i64: 1, 5>}, {transform_indices = @transform_3, window_bounds = array<i64: 2, 128>}]} {
    %c0 = arith.constant 0 : index
    %c0_0 = arith.constant 0 : index
    %0 = vector.load %arg1[%c0, %c0_0] : memref<2x32xf32, #tpu.memory_space<vmem>>, vector<2x32xf32>
    %c0_1 = arith.constant 0 : index
    %c0_2 = arith.constant 0 : index
    %1 = vector.load %arg2[%c0_1, %c0_2] : memref<32x5xf32, #tpu.memory_space<vmem>>, vector<32x5xf32>
    %c0_3 = arith.constant 0 : index
    %c0_4 = arith.constant 0 : index
    %2 = vector.load %arg3[%c0_3, %c0_4] : memref<1x5xf32, #tpu.memory_space<vmem>>, vector<1x5xf32>
    %cst = arith.constant dense<0.000000e+00> : vector<2x5xf32>
    %3 = tpu.matmul %0, %1, %cst {dimension_numbers = #tpu.dot_dimension_numbers<[1], [0], [0], [1], [0, 0, 1, 1], [], []>} : vector<2x32xf32>, vector<32x5xf32>, vector<2x5xf32> -> vector<2x5xf32>
    %4 = vector.broadcast %2 : vector<1x5xf32> to vector<2x5xf32>
    %5 = arith.addf %3, %4 : vector<2x5xf32>
    %6 = vector.extract_strided_slice %5 {offsets = [0, 0], sizes = [2, 4], strides = [1, 1]} : vector<2x5xf32> to vector<2x4xf32>
    %7 = vector.extract_strided_slice %5 {offsets = [0, 4], sizes = [2, 1], strides = [1, 1]} : vector<2x5xf32> to vector<2x1xf32>
    %cst_5 = arith.constant dense<0xFF800000> : vector<2xf32>
    %8 = vector.multi_reduction <maximumf>, %6, %cst_5 [1] : vector<2x4xf32> to vector<2xf32>
    %9 = vector.shape_cast %8 : vector<2xf32> to vector<2x1xf32>
    %10 = vector.broadcast %9 : vector<2x1xf32> to vector<2x4xf32>
    %11 = arith.subf %6, %10 : vector<2x4xf32>
    %12 = math.exp %11 : vector<2x4xf32>
    %cst_6 = arith.constant dense<0.000000e+00> : vector<2xf32>
    %13 = vector.multi_reduction <add>, %12, %cst_6 [1] : vector<2x4xf32> to vector<2xf32>
    %14 = vector.shape_cast %13 : vector<2xf32> to vector<2x1xf32>
    %15 = math.log %14 : vector<2x1xf32>
    %16 = vector.broadcast %15 : vector<2x1xf32> to vector<2x4xf32>
    %17 = arith.subf %11, %16 : vector<2x4xf32>
    %18 = math.exp %17 : vector<2x4xf32>
    %19 = tpu.iota {dimensions = array<i32: 1>} : vector<2x4xi32>
    %20 = vector.broadcast %9 : vector<2x1xf32> to vector<2x4xf32>
    %21 = arith.cmpf oge, %6, %20 : vector<2x4xf32>
    %c4_i32 = arith.constant 4 : i32
    %22 = vector.broadcast %c4_i32 : i32 to vector<2x4xi32>
    %23 = arith.select %21, %19, %22 : vector<2x4xi1>, vector<2x4xi32>
    %cst_7 = arith.constant dense<2147483647> : vector<2xi32>
    %24 = vector.multi_reduction <minsi>, %23, %cst_7 [1] : vector<2x4xi32> to vector<2xi32>
    %25 = vector.shape_cast %24 : vector<2xi32> to vector<2x1xi32>
    %c3_i32 = arith.constant 3 : i32
    %26 = vector.broadcast %c3_i32 : i32 to vector<2x1xi32>
    %27 = arith.minsi %25, %26 : vector<2x1xi32>
    %cst_8 = arith.constant 0.000000e+00 : f32
    %28 = vector.broadcast %cst_8 : f32 to vector<2x1xf32>
    %29 = arith.subf %28, %15 : vector<2x1xf32>
    %30 = arith.mulf %18, %17 : vector<2x4xf32>
    %cst_9 = arith.constant dense<0.000000e+00> : vector<2xf32>
    %31 = vector.multi_reduction <add>, %30, %cst_9 [1] : vector<2x4xf32> to vector<2xf32>
    %32 = vector.shape_cast %31 : vector<2xf32> to vector<2x1xf32>
    %cst_10 = arith.constant 0.000000e+00 : f32
    %33 = vector.broadcast %cst_10 : f32 to vector<2x1xf32>
    %34 = arith.subf %33, %32 : vector<2x1xf32>
    %35 = tpu.iota {dimensions = array<i32: 1>} : vector<2x128xi32>
    %cst_11 = arith.constant 0.000000e+00 : f32
    %36 = vector.broadcast %cst_11 : f32 to vector<2x128xf32>
    %c0_i32 = arith.constant 0 : i32
    %37 = vector.broadcast %c0_i32 : i32 to vector<2x128xi32>
    %38 = arith.cmpi eq, %35, %37 : vector<2x128xi32>
    %39 = vector.shape_cast %7 : vector<2x1xf32> to vector<2x1xf32>
    %40 = vector.broadcast %39 : vector<2x1xf32> to vector<2x128xf32>
    %41 = arith.select %38, %40, %36 : vector<2x128xi1>, vector<2x128xf32>
    %c1_i32 = arith.constant 1 : i32
    %42 = vector.broadcast %c1_i32 : i32 to vector<2x128xi32>
    %43 = arith.cmpi eq, %35, %42 : vector<2x128xi32>
    %44 = arith.sitofp %27 : vector<2x1xi32> to vector<2x1xf32>
    %45 = vector.shape_cast %44 : vector<2x1xf32> to vector<2x1xf32>
    %46 = vector.broadcast %45 : vector<2x1xf32> to vector<2x128xf32>
    %47 = arith.select %43, %46, %41 : vector<2x128xi1>, vector<2x128xf32>
    %c2_i32 = arith.constant 2 : i32
    %48 = vector.broadcast %c2_i32 : i32 to vector<2x128xi32>
    %49 = arith.cmpi eq, %35, %48 : vector<2x128xi32>
    %50 = vector.shape_cast %29 : vector<2x1xf32> to vector<2x1xf32>
    %51 = vector.broadcast %50 : vector<2x1xf32> to vector<2x128xf32>
    %52 = arith.select %49, %51, %47 : vector<2x128xi1>, vector<2x128xf32>
    %c3_i32_12 = arith.constant 3 : i32
    %53 = vector.broadcast %c3_i32_12 : i32 to vector<2x128xi32>
    %54 = arith.cmpi eq, %35, %53 : vector<2x128xi32>
    %55 = vector.shape_cast %34 : vector<2x1xf32> to vector<2x1xf32>
    %56 = vector.broadcast %55 : vector<2x1xf32> to vector<2x128xf32>
    %57 = arith.select %54, %56, %52 : vector<2x128xi1>, vector<2x128xf32>
    %c0_13 = arith.constant 0 : index
    %c0_14 = arith.constant 0 : index
    %58 = vector.load %arg4[%c0_13, %c0_14] : memref<2x128xf32, #tpu.memory_space<vmem>>, vector<2x128xf32>
    tpu.vector_store %arg4[%c0_13, %c0_14], %57 {strides = array<i32>} : memref<2x128xf32, #tpu.memory_space<vmem>>, vector<2x128xf32>,
    return
  }
  func.func @transform_0(%arg0: i32) -> (i32, i32) {
    %c0_i32 = arith.constant 0 : i32
    %c0_i32_0 = arith.constant 0 : i32
    return %arg0, %c0_i32 : i32, i32
  }
  func.func @transform_1(%arg0: i32) -> (i32, i32) {
    %c0_i32 = arith.constant 0 : i32
    %c0_i32_0 = arith.constant 0 : i32
    %c0_i32_1 = arith.constant 0 : i32
    return %c0_i32, %c0_i32_0 : i32, i32
  }
  func.func @transform_2(%arg0: i32) -> (i32, i32) {
    %c0_i32 = arith.constant 0 : i32
    %c0_i32_0 = arith.constant 0 : i32
    %c0_i32_1 = arith.constant 0 : i32
    return %c0_i32, %c0_i32_0 : i32, i32
  }
  func.func @transform_3(%arg0: i32) -> (i32, i32) {
    %c0_i32 = arith.constant 0 : i32
    %c0_i32_0 = arith.constant 0 : i32
    return %arg0, %c0_i32 : i32, i32
  }
}

</mosaic_0001>

<bundles_post_ra>
// kernel: policy_non_oracle_heads.1
= control target key start
LH: loop header
LB: loop body
LE: loop exit
PB: predicated region body
PF: predicated region fallthrough
CT: control target
= control target key end

     0   :  { %vm23_vm0 = vcmask 261120   ;;  %vm47_vm1 = vcmask 25600   ;;  %v62_v9 = vlaneseq  ;;  %v119_v21 = vmov 4   ;;  %s165_s1 = inlined_call_operand.vmem [shape: f32[32,5], index: 1, kind: input, shape index: {}]   ;;  %s166_s2 = inlined_call_operand.vmem [shape: f32[1,5], index: 2, kind: input, shape index: {}]   ;;  %s167_s0 = inlined_call_operand.vmem [shape: f32[2,32], index: 0, kind: input, shape index: {}]   ;;  %s168_s3 = inlined_call_operand.vmem [shape: f32[2,128], index: 3, kind: output, shape index: {}]  }
   0x1   :  { %v18_v0 = vld [vmem:[%s165_s1 + $0x18] sm:$0xff]  ;;  %v17_v1 = vld [vmem:[%s165_s1 + $0x10] sm:$0xff]  ;;  %v16_v2 = vld [vmem:[%s165_s1 + $0x8] sm:$0xff]  ;;  %110 = vset.pattern.permute.xlu2 %v119_v21  ;;  %111 = vset.pattern.permute.xlu0 %v119_v21 }
   0x2   :  { %39 = vmatpush.msra.mxu0 %v18_v0  ;;  %v15_v3 = vld [vmem:[%s165_s1] sm:$0xff]  ;;  %v63_v10 = vand.u32 127, %v62_v9 }
   0x3   :  { %v14_v4 = vld [vmem:[%s167_s0] sm:$0x3] }
   0x4   :  { %40 = vmatpush.msra.mxu0 %v17_v1  ;;  %v112_v5 = vld [vmem:[%s166_s2] ss:$0 sm:$0xff]  ;;  %vm89_vm5 = vcmp.eq.s32.totalorder %v63_v10, 0  ;;  %vm96_vm6 = vcmp.eq.s32.totalorder %v63_v10, 1  ;;  %vm99_vm7 = vcmp.eq.s32.totalorder %v63_v10, 2  ;;  %vm101_vm8 = vcmp.eq.s32.totalorder %v63_v10, 3 }
   0x6   :  { %41 = vmatpush.msra.mxu0 %v16_v2 }
   0x8   :  { %42 = vmatpush.msra.mxu0 %v15_v3 }
   0x9   :  { %108 = vmatmul.msk.f32.vlgmr.msra.gmra.mxu0 %vm23_vm0, %v14_v4 }
  0x86   :  { %v44_v6 = vpop.f32.mrf.mxu0 }
  0x87   :  { %v45_v7 = vadd.f32 %v112_v5, %v44_v6 }
  0x89   :  { %v48_v8 = vsel %vm47_vm1, %v45_v7, -inf }
  0x8a   :  { %49 = vmax.xlane.f32.xlu0 %v48_v8 }
  0xfd   :  { %v50_v11 = vpop.xlane.xlu0 %49 }
  0xfe   :  { %v51_v12 = vsub.f32 %v45_v7, %v50_v11  ;;  %vm64_vm2 = vcmp.ge.f32.partialorder %v45_v7, %v50_v11 }
  0xff   :  { %v65_v13 = vsel %vm64_vm2, %v63_v10, 4 }
 0x100   :  { %v52_v14 = vmul.f32 1.442695, %v51_v12  ;;  %v66_v15 = vsel %vm47_vm1, %v65_v13, 2147483647 }
 0x101   :  { %v68_v16 = vshra.s32 %v66_v15, 16  ;;  %v67_v20 = vand.u32 65535, %v66_v15 }
 0x102   :  { %113 = vpow2.f32 %v52_v14 }
 0x103   :  { %v70_v17 = vcvt.s32.f32 %v68_v16  ;;  %v69_v23 = vcvt.s32.f32 %v67_v20 }
 0x105   :  { %71 = vmin.xlane.f32.xlu1 %v70_v17 }
 0x108   :  { %v114_v18 = vpop.eup %113 }
 0x109   :  { %v54_v19 = vsel %vm47_vm1, %v114_v18, 0.0 }
 0x10a   :  { %55 = vadd.xlane.f32.xlu0 %v54_v19 }
 0x178   :  { %v72_v22 = vpop.xlane.xlu1 %71 }
 0x179   :  { %vm73_vm3 = vcmp.eq.f32.partialorder %v70_v17, %v72_v22  ;;  %v78_v34 = vcvt.f32.s32 %v72_v22 }
 0x17a   :  { %v74_v24 = vsel %vm73_vm3, %v69_v23, inf }
 0x17b   :  { %75 = vmin.xlane.f32.xlu1 %v74_v24  ;;  %v79_v36 = vshll.u32 %v78_v34, 16 }
 0x17d   :  { %v56_v25 = vpop.xlane.xlu0 %55 }
 0x17e   :  { %115 = vlog2.f32 %v56_v25 }
 0x184   :  { %v116_v26 = vpop.eup %115 }
 0x185   :  { %v58_v27 = vmul.f32 0.6931472, %v116_v26 }
 0x187   :  { %v59_v28 = vsub.f32 %v51_v12, %v58_v27  ;;  %v83_v42 = vsub.f32 0.0, %v58_v27 }
 0x189   :  { %v60_v29 = vmul.f32 1.442695, %v59_v28 }
 0x18b   :  { %117 = vpow2.f32 %v60_v29 }
 0x191   :  { %v118_v30 = vpop.eup %117 }
 0x192   :  { %v84_v31 = vmul.f32 %v118_v30, %v59_v28 }
 0x194   :  { %v85_v32 = vsel %vm47_vm1, %v84_v31, 0.0 }
 0x195   :  { %86 = vadd.xlane.f32.xlu2 %v85_v32 }
 0x1ad   :  { %92 = vperm.xlu2 %110, %v45_v7  }
 0x1ee   :  { %v76_v33 = vpop.xlane.xlu1 %75 }
 0x1ef   :  { %v77_v35 = vcvt.f32.s32 %v76_v33 }
 0x1f1   :  { %v80_v37 = vadd.s32 %v79_v36, %v77_v35 }
 0x1f3   :  { %vm81_vm4 = vcmp.lt.s32.totalorder %v80_v37, 3 }
 0x1f4   :  { %v82_v39 = vsel %vm81_vm4, %v80_v37, 3 }
 0x1f5   :  { %v97_v40 = vcvt.s32.f32 %v82_v39 }
 0x208   :  { %v87_v38 = vpop.xlane.xlu2 %86 }
 0x209   :  { %v88_v44 = vsub.f32 0.0, %v87_v38 }
 0x210   :  { %v93_v41 = vpop.permute.xlu2 %92 }
 0x211   :  { %v95_v43 = vsel %vm89_vm5, %v93_v41, 0.0 }
 0x212   :  { %v98_v45 = vsel %vm96_vm6, %v97_v40, %v95_v43 }
 0x213   :  { %v100_v46 = vsel %vm99_vm7, %v83_v42, %v98_v45 }
 0x214   :  { %v102_v47 = vsel %vm101_vm8, %v88_v44, %v100_v46 }
 0x215   :  { %103 = vst [vmem:[%s168_s3] sm:$0x3] %v102_v47 }

</bundles_post_ra>
